<compile_context>
chip_gen: v5e
topology: v5e:2x2
jax: 0.10.0
libtpu: 0.0.40
codegen_flags: <defaults>
</compile_context>

<pallas_src>
import jax
import jax.numpy as jnp
from jax import lax
from jax.experimental import pallas as pl
from jax.experimental.pallas import tpu as pltpu

LANES = 128
SUBLANES = 8
MAX_BLOCK_ROWS = 8192            # 8192 x 128 x 4 B = 4 MiB per input block
_ALIGN = SUBLANES * LANES        # 1024 elements = one f32 vreg


def generation_loss(ground_truth, generation):
    """MSE loss (mean reduction), matching F.mse_loss(ground_truth, generation)."""
    assert ground_truth.shape == generation.shape
    total = int(ground_truth.size)

    gt = ground_truth.reshape(-1)
    gen = generation.reshape(-1)

    # Minimal alignment pad only (to one vreg), not to the big block size: the
    # common case (sizes divisible by 1024) pays no pad copy at all, and
    # partial *blocks* are handled in-kernel by masking instead.
    padded = pl.cdiv(total, _ALIGN) * _ALIGN
    if padded != total:
        gt = jnp.pad(gt, (0, padded - total))     # identical pads -> contribute 0
        gen = jnp.pad(gen, (0, padded - total))

    rows = padded // LANES                        # multiple of 8
    gt2 = gt.reshape(rows, LANES)
    gen2 = gen.reshape(rows, LANES)

    block_rows = min(MAX_BLOCK_ROWS, rows)        # multiple of 8, never > array
    n_blocks = pl.cdiv(rows, block_rows)
    # Leading "parallel" axis so v7x's second TensorCore takes half the blocks;
    # a no-op on single-TC v5e/v6e (grid just runs sequentially).
    num_slices = 2 if n_blocks >= 2 else 1
    blocks_per_slice = pl.cdiv(n_blocks, num_slices)
    needs_mask = (rows % block_rows != 0) or (num_slices * blocks_per_slice != n_blocks)

    def kernel(gt_ref, gen_ref, out_ref):
        j = pl.program_id(1)

        @pl.when(j == 0)
        def _():
            out_ref[...] = jnp.zeros_like(out_ref)

        d = gt_ref[...].astype(jnp.float32) - gen_ref[...].astype(jnp.float32)
        sq = d * d

        if needs_mask:
            # Zero contributions from rows past the true extent: covers both the
            # ragged last block and clamped duplicate blocks on the short slice.
            g = pl.program_id(0) * blocks_per_slice + j
            row_ids = g * block_rows + lax.broadcasted_iota(
                jnp.int32, (block_rows, 1), 0)
            sq = jnp.where(row_ids < rows, sq, 0.0)

        # Vreg-shaped partial sums: reducing the leading axis is just elementwise
        # VPU adds of (8,128) slabs; the expensive cross-lane reduce is done once,
        # outside the kernel, on the tiny output.
        partial = sq.reshape(block_rows // SUBLANES, SUBLANES, LANES).sum(axis=0)
        out_ref[...] += partial[None]

    def in_map(c, j):
        g = c * blocks_per_slice + j
        return (jnp.minimum(g, n_blocks - 1), 0)   # clamp keeps the DMA in-bounds

    partials = pl.pallas_call(
        kernel,
        out_shape=jax.ShapeDtypeStruct((num_slices, SUBLANES, LANES), jnp.float32),
        grid_spec=pltpu.PrefetchScalarGridSpec(
            num_scalar_prefetch=0,
            grid=(num_slices, blocks_per_slice),
            in_specs=[
                pl.BlockSpec((block_rows, LANES), in_map),
                pl.BlockSpec((block_rows, LANES), in_map),
            ],
            out_specs=pl.BlockSpec((1, SUBLANES, LANES), lambda c, j: (c, 0, 0)),
        ),
        compiler_params=pltpu.CompilerParams(
            dimension_semantics=("parallel", "arbitrary"),
            vmem_limit_bytes=32 * 1024 * 1024,
        ),
    )(gt2, gen2)

    # Single tiny cross-lane reduce + mean divide (true element count).
    return (jnp.sum(partials) / jnp.float32(total)).astype(jnp.float32)


if __name__ == "__main__":
    key = jax.random.PRNGKey(0)
    k1, k2, k3, k4 = jax.random.split(key, 4)

    # Small NCHW-style generation / ground-truth pair.
    shape = (2, 4, 16, 16)
    ground_truth = jax.random.normal(k1, shape, dtype=jnp.float32)
    generation = jax.random.normal(k2, shape, dtype=jnp.float32)

    loss = generation_loss(ground_truth, generation)
    jax.block_until_ready(loss)
    ref = jnp.mean((ground_truth - generation) ** 2)
    assert jnp.allclose(loss, ref, rtol=1e-5, atol=1e-6), (loss, ref)

    # Second check exercising the multi-block / masked / dual-slice path.
    shape2 = (2, 4, 399, 399)
    gt_big = jax.random.normal(k3, shape2, dtype=jnp.float32)
    gen_big = jax.random.normal(k4, shape2, dtype=jnp.float32)
    loss2 = generation_loss(gt_big, gen_big)
    jax.block_until_ready(loss2)
    ref2 = jnp.mean((gt_big - gen_big) ** 2)
    assert jnp.allclose(loss2, ref2, rtol=1e-4, atol=1e-6), (loss2, ref2)

    print("KERNEL_OK")
</pallas_src>

<mosaic_0001>
module attributes {stable_mosaic.version = 11 : i64} {
  func.func @kernel(%arg0: i32, %arg1: i32, %arg2: memref<16x128xf32, #tpu.memory_space<vmem>>, %arg3: memref<16x128xf32, #tpu.memory_space<vmem>>, %arg4: memref<1x8x128xf32, #tpu.memory_space<vmem>>) attributes {dimension_semantics = [#tpu.dimension_semantics<parallel>, #tpu.dimension_semantics<arbitrary>], iteration_bounds = array<i64: 1, 1>, scalar_prefetch = 0 : i64, scratch_operands = 0 : i64, tpu.core_type = #tpu.core_type<tc>, window_params = [{transform_indices = @transform_0, window_bounds = array<i64: 16, 128>}, {transform_indices = @transform_1, window_bounds = array<i64: 16, 128>}, {transform_indices = @transform_2, window_bounds = array<i64: 1, 8, 128>}]} {
    %c0_i32 = arith.constant 0 : i32
    %0 = arith.cmpi eq, %arg1, %c0_i32 : i32
    %1 = arith.extui %0 : i1 to i32
    %c0_i32_0 = arith.constant 0 : i32
    %2 = arith.cmpi ne, %1, %c0_i32_0 : i32
    scf.if %2 {
      %cst_10 = arith.constant 0.000000e+00 : f32
      %13 = vector.broadcast %cst_10 : f32 to vector<1x8x128xf32>
      %c0_11 = arith.constant 0 : index
      %c0_12 = arith.constant 0 : index
      %c0_13 = arith.constant 0 : index
      %14 = vector.load %arg4[%c0_11, %c0_12, %c0_13] : memref<1x8x128xf32, #tpu.memory_space<vmem>>, vector<1x8x128xf32>
      tpu.vector_store %arg4[%c0_11, %c0_12, %c0_13], %13 {strides = array<i32>} : memref<1x8x128xf32, #tpu.memory_space<vmem>>, vector<1x8x128xf32>,
    } else {
    }
    %c0 = arith.constant 0 : index
    %c0_1 = arith.constant 0 : index
    %3 = vector.load %arg2[%c0, %c0_1] : memref<16x128xf32, #tpu.memory_space<vmem>>, vector<16x128xf32>
    %c0_2 = arith.constant 0 : index
    %c0_3 = arith.constant 0 : index
    %4 = vector.load %arg3[%c0_2, %c0_3] : memref<16x128xf32, #tpu.memory_space<vmem>>, vector<16x128xf32>
    %5 = arith.subf %3, %4 : vector<16x128xf32>
    %6 = arith.mulf %5, %5 : vector<16x128xf32>
    %7 = vector.shape_cast %6 : vector<16x128xf32> to vector<2x8x128xf32>
    %cst = arith.constant dense<0.000000e+00> : vector<8x128xf32>
    %8 = vector.multi_reduction <add>, %7, %cst [0] : vector<2x8x128xf32> to vector<8x128xf32>
    %c0_4 = arith.constant 0 : index
    %c0_5 = arith.constant 0 : index
    %c0_6 = arith.constant 0 : index
    %9 = vector.load %arg4[%c0_4, %c0_5, %c0_6] : memref<1x8x128xf32, #tpu.memory_space<vmem>>, vector<1x8x128xf32>
    %10 = vector.shape_cast %8 : vector<8x128xf32> to vector<1x8x128xf32>
    %11 = arith.addf %9, %10 : vector<1x8x128xf32>
    %c0_7 = arith.constant 0 : index
    %c0_8 = arith.constant 0 : index
    %c0_9 = arith.constant 0 : index
    %12 = vector.load %arg4[%c0_7, %c0_8, %c0_9] : memref<1x8x128xf32, #tpu.memory_space<vmem>>, vector<1x8x128xf32>
    tpu.vector_store %arg4[%c0_7, %c0_8, %c0_9], %11 {strides = array<i32>} : memref<1x8x128xf32, #tpu.memory_space<vmem>>, vector<1x8x128xf32>,
    return
  }
  func.func @transform_0(%arg0: i32, %arg1: i32) -> (i32, i32) {
    %c1_i32 = arith.constant 1 : i32
    %0 = arith.muli %arg0, %c1_i32 : i32
    %1 = arith.addi %0, %arg1 : i32
    %c0_i32 = arith.constant 0 : i32
    %2 = arith.minsi %1, %c0_i32 : i32
    %c0_i32_0 = arith.constant 0 : i32
    %c0_i32_1 = arith.constant 0 : i32
    return %2, %c0_i32_0 : i32, i32
  }
  func.func @transform_1(%arg0: i32, %arg1: i32) -> (i32, i32) {
    %c1_i32 = arith.constant 1 : i32
    %0 = arith.muli %arg0, %c1_i32 : i32
    %1 = arith.addi %0, %arg1 : i32
    %c0_i32 = arith.constant 0 : i32
    %2 = arith.minsi %1, %c0_i32 : i32
    %c0_i32_0 = arith.constant 0 : i32
    %c0_i32_1 = arith.constant 0 : i32
    return %2, %c0_i32_0 : i32, i32
  }
  func.func @transform_2(%arg0: i32, %arg1: i32) -> (i32, i32, i32) {
    %c0_i32 = arith.constant 0 : i32
    %c0_i32_0 = arith.constant 0 : i32
    %c0_i32_1 = arith.constant 0 : i32
    return %arg0, %c0_i32, %c0_i32_0 : i32, i32, i32
  }
}

</mosaic_0001>

<bundles_post_ra>
// kernel: tpu_custom_call.1
= control target key start
LH: loop header
LB: loop body
LE: loop exit
PB: predicated region body
PF: predicated region fallthrough
CT: control target
= control target key end

     0   :  { %7 = vsyncpa [#allocation3], 0  ;;  %s216_s0 = inlined_call_operand.hbm [shape: f32[16,128], index: 0, kind: input, shape index: {}]   ;;  %s217_s1 = inlined_call_operand.hbm [shape: f32[16,128], index: 1, kind: input, shape index: {}]   ;;  %s218_s2 = inlined_call_operand.hbm [shape: f32[1,8,128], index: 2, kind: output, shape index: {}]  }
   0x1   :  { %8 = vsyncpa [#allocation6], 0 }
   0x2   :  { %9 = vsyncpa [#allocation4], 0  ;;  %s20_s11 = sshll.u32 %s216_s0, 4  ;;  %s187_s12 = smov [#allocation2]   ;;  %s21_s11 = int_to_ptr.hbm [resolvable:$true] %s20_s11 }
   0x3   :  { %s22_s13 = sshll.u32 %s187_s12, 4  ;;  %s39_s16 = sshll.u32 %s217_s1, 4  ;;  %s23_s13 = int_to_ptr.vmem [resolvable:$true] %s22_s13  ;;  %s40_s16 = int_to_ptr.hbm [resolvable:$true] %s39_s16 }
   0x4   :  { %s188_s17 = smov 128   ;;  %s189_s18 = smov 8  }
   0x5   :  { %28 = dma.hbm_to_vmem [thread:$0]  %s21_s11, 256, %s23_s13, [#allocation3], %s188_s17, %s188_s17, %s189_s18  }
   0x6   :  { %s190_s19 = smov [#allocation5]  }
   0x7   :  { %s41_s20 = sshll.u32 %s190_s19, 4  ;;  %s42_s20 = int_to_ptr.vmem [resolvable:$true] %s41_s20 }
   0x8   :  { %47 = dma.hbm_to_vmem [thread:$0]  %s40_s16, 256, %s42_s20, [#allocation6], %s188_s17, %s188_s17, %s189_s18  }
   0x9   :  { %181 = dma.done.wait [#allocation3], 256  }
   0xa   :  { %182 = vsyncadd [#allocation3], 4294967040 }
   0xb   :  { %183 = dma.done.wait [#allocation6], 256  }
   0xc   :  { %184 = vsyncadd [#allocation6], 4294967040  ;;  %v69_v0 = vld [vmem:[#allocation2] sm:$0xff]  ;;  %v70_v1 = vld [vmem:[#allocation2 + $0x8] sm:$0xff]  ;;  %s191_s0 = smov [#allocation7]   ;;  %s88_s23 = sshll.u32 %s218_s2, 4  ;;  %s89_s23 = int_to_ptr.hbm [resolvable:$true] %s88_s23 }
   0xd   :  { %v71_v2 = vld [vmem:[#allocation5] sm:$0xff]  ;;  %v72_v3 = vld [vmem:[#allocation5 + $0x8] sm:$0xff]  ;;  %s86_s1 = sshll.u32 %s191_s0, 4  ;;  %s87_s1 = int_to_ptr.vmem [resolvable:$true] %s86_s1 }
   0xe   :  { %v73_v4 = vsub.f32 %v69_v0, %v71_v2  ;;  %v74_v5 = vsub.f32 %v70_v1, %v72_v3 }
  0x10   :  { %v75_v6 = vmul.f32 %v73_v4, %v73_v4  ;;  %v76_v7 = vmul.f32 %v74_v5, %v74_v5 }
  0x12   :  { %v77_v8 = vadd.f32 %v76_v7, %v75_v6 }
  0x14   :  { %80 = vst [vmem:[#allocation7] sm:$0xff] %v77_v8 }
  0x15   :  { %91 = dma.vmem_to_hbm [thread:$0]  %s87_s1, 128, %s89_s23, [#allocation4]  }
  0x16   :  { %185 = dma.done.wait [#allocation4], 128  }
  0x17   :  { %186 = vsyncadd [#allocation4], 4294967168 }
  0x18   :  { %96 = vsyncpa [#allocation3], 1 }
  0x19   :  { %97 = vsyncpa [#allocation6], 1 }
  0x1a   :  { %98 = vsyncpa [#allocation4], 1 }

</bundles_post_ra>
